<compile_context>
chip_gen: v6e
topology: v6e:2x2x1
jax: 0.10.0
libtpu: 0.0.40
codegen_flags: <defaults>
</compile_context>

<pallas_src>
import functools
import math

import jax
import jax.numpy as jnp
from jax.experimental import pallas as pl
from jax.experimental.pallas import tpu as pltpu

_EPS = 1e-5
_LANE = 128


def _round_up(x, m):
    return ((x + m - 1) // m) * m


def prenorm_kernel(x_ref, gamma_ref, beta_ref, w_ref, b_ref, o_ref, *,
                   d_true, d_pad):
    # x_ref: (TM, Dp) tile of flattened tokens (zero-padded beyond d_true).
    x = x_ref[...].astype(jnp.float32)
    inv_d = jnp.float32(1.0 / d_true)

    # LayerNorm stats over the true feature width.  Padded columns are zero, so
    # the plain sum is exact; the centered second pass is masked so the
    # (0 - mean) residues in the pad don't pollute the variance.  Two-pass form
    # avoids E[x^2]-mean^2 cancellation.
    mean = jnp.sum(x, axis=-1, keepdims=True) * inv_d
    xc = x - mean
    if d_pad != d_true:
        lane = jax.lax.broadcasted_iota(jnp.int32, x.shape, dimension=x.ndim - 1)
        xc = jnp.where(lane < d_true, xc, 0.0)
    var = jnp.sum(xc * xc, axis=-1, keepdims=True) * inv_d
    inv_std = jax.lax.rsqrt(var + _EPS)

    # Affine.  gamma/beta are zero in padded columns -> padded y columns are
    # exactly zero and contribute nothing to the matmul.
    gamma = gamma_ref[...].astype(jnp.float32)
    beta = beta_ref[...].astype(jnp.float32)
    y = xc * inv_std * gamma + beta

    # fn(x) = Linear.  Feed the MXU its native bf16 operands, accumulate in f32.
    out = jnp.dot(y.astype(jnp.bfloat16), w_ref[...],
                  preferred_element_type=jnp.float32)
    out = out + b_ref[...].astype(jnp.float32)
    o_ref[...] = out.astype(o_ref.dtype)


def _sublane_multiple(dtype):
    return {4: 8, 2: 16, 1: 32}.get(jnp.dtype(dtype).itemsize, 8)


def _choose_tm(M, block_rows, dtype):
    """Row tile: dtype-aligned, and prefer >=4 grid steps (v7x has 2 TCs)."""
    mult = _sublane_multiple(dtype)
    tm = max(mult, min(_round_up(M, mult), (block_rows // mult) * mult or mult))
    while tm > mult and pl.cdiv(M, tm) < 4:
        tm = max(mult, (tm // 2 // mult) * mult)
    return tm


def _choose_tn(d_pad, budget_bytes=8 << 20):
    """Output-N tile of the bf16 weight block; keep it under budget_bytes."""
    tn = d_pad
    while tn > _LANE and d_pad * tn * 2 > budget_bytes:
        half = max(_LANE, (tn // 2 // _LANE) * _LANE)
        if d_pad % half != 0:
            break
        tn = half
    return tn


def _vmem_limit_bytes(tm, d_pad, tn, x_itemsize, out_itemsize):
    x_tile = tm * d_pad * x_itemsize          # streamed input tile
    o_tile = tm * tn * out_itemsize           # streamed output tile
    w_block = d_pad * tn * 2                  # bf16 weight block
    params = 3 * d_pad * 4                    # gamma/beta/bias (f32)
    scratch = 4 * tm * d_pad * 4 + tm * tn * 4  # in-kernel f32 intermediates
    need = 2 * (x_tile + o_tile) + 2 * w_block + params + scratch
    try:
        cap = pltpu.get_tpu_info().vmem_capacity_bytes
    except Exception:
        cap = 64 << 20  # conservative: v7x per-TC VMEM
    # Floor at the 32 MiB default scoped limit, never request more than 80% of
    # physical (leaves headroom for Mosaic internal scratch; ~51 MiB on v7x,
    # ~102 MiB on v5e/v6e).
    return int(min(max(int(need * 1.5) + (8 << 20), 32 << 20), int(cap * 0.8)))


def prenorm_fn(x, gamma, beta, w, b, *, block_rows=512):
    """PreNorm forward: y = Linear(LayerNorm(x)).  x: (..., D) -> (..., D)."""
    orig_shape = x.shape
    D = orig_shape[-1]
    M = int(math.prod(orig_shape[:-1]))
    out_dtype = x.dtype

    d_pad = _round_up(D, _LANE)
    tm = _choose_tm(M, block_rows, x.dtype)
    m_pad = _round_up(M, tm)
    tn = _choose_tn(d_pad)
    n_i, n_j = m_pad // tm, d_pad // tn

    # Lane-dense zero padding of the feature dim; row padding so every grid
    # block is full (no garbage stats / NaNs in masked-off rows).
    x2 = jnp.pad(x.reshape(M, D), ((0, m_pad - M), (0, d_pad - D)))
    gamma_p = jnp.pad(gamma.astype(jnp.float32).reshape(1, D), ((0, 0), (0, d_pad - D)))
    beta_p = jnp.pad(beta.astype(jnp.float32).reshape(1, D), ((0, 0), (0, d_pad - D)))
    w_p = jnp.pad(w.astype(jnp.bfloat16), ((0, d_pad - D), (0, d_pad - D)))
    b_p = jnp.pad(b.astype(jnp.float32).reshape(1, D), ((0, 0), (0, d_pad - D)))

    vmem_limit = _vmem_limit_bytes(tm, d_pad, tn,
                                   jnp.dtype(x.dtype).itemsize,
                                   jnp.dtype(out_dtype).itemsize)

    def _param_spec(shape, index_map, single):
        if single and hasattr(pl, "Buffered"):
            return pl.BlockSpec(shape, index_map, pipeline_mode=pl.Buffered(1))
        return pl.BlockSpec(shape, index_map)

    def _build(single_buffer_params):
        in_specs = [
            pl.BlockSpec((tm, d_pad), lambda i, j: (i, 0)),   # x rows (streamed)
            _param_spec((1, d_pad), lambda i, j: (0, 0), single_buffer_params),
            _param_spec((1, d_pad), lambda i, j: (0, 0), single_buffer_params),
            _param_spec((d_pad, tn), lambda i, j: (0, j),
                        single_buffer_params and n_j == 1),   # W block
            _param_spec((1, tn), lambda i, j: (0, j),
                        single_buffer_params and n_j == 1),   # bias block
        ]
        return pl.pallas_call(
            functools.partial(prenorm_kernel, d_true=D, d_pad=d_pad),
            out_shape=jax.ShapeDtypeStruct((m_pad, d_pad), out_dtype),
            grid=(n_i, n_j),
            in_specs=in_specs,
            out_specs=pl.BlockSpec((tm, tn), lambda i, j: (i, j)),
            compiler_params=pltpu.CompilerParams(
                dimension_semantics=("parallel", "parallel"),
                vmem_limit_bytes=vmem_limit,
            ),
        )

    try:
        out = _build(True)(x2, gamma_p, beta_p, w_p, b_p)
    except Exception:
        # Robust fallback: default double-buffering everywhere (same semantics).
        out = _build(False)(x2, gamma_p, beta_p, w_p, b_p)

    return out[:M, :D].reshape(orig_shape)


def reference(x, gamma, beta, w, b):
    """Pure-f32 PyTorch-semantics reference (LayerNorm then Linear)."""
    xf = x.astype(jnp.float32)
    mean = jnp.mean(xf, axis=-1, keepdims=True)
    var = jnp.mean((xf - mean) ** 2, axis=-1, keepdims=True)
    y = (xf - mean) / jnp.sqrt(var + _EPS) * gamma + beta
    return (y @ w + b).astype(x.dtype)


def reference_bf16_mxu(x, gamma, beta, w, b):
    """Reference that mirrors the kernel's bf16 MXU feed (f32 accumulation)."""
    xf = x.astype(jnp.float32)
    mean = jnp.mean(xf, axis=-1, keepdims=True)
    var = jnp.mean((xf - mean) ** 2, axis=-1, keepdims=True)
    y = (xf - mean) / jnp.sqrt(var + _EPS) * gamma + beta
    out = jnp.dot(y.astype(jnp.bfloat16), w.astype(jnp.bfloat16),
                  preferred_element_type=jnp.float32) + b
    return out.astype(x.dtype)


if __name__ == "__main__":
    key = jax.random.PRNGKey(0)
    B, N, D = 2, 8, 32  # M = 16 rows; D padded to 128 inside prenorm_fn

    k_x, k_w, k_b = jax.random.split(key, 3)
    x = jax.random.normal(k_x, (B, N, D), dtype=jnp.float32)

    # LayerNorm params (PyTorch default init: weight=1, bias=0).
    gamma = jnp.ones((D,), dtype=jnp.float32)
    beta = jnp.zeros((D,), dtype=jnp.float32)

    # Wrapped fn params: Linear(dim, dim), deterministic init.
    # TODO(synk): the wrapped `fn` in PreNorm is arbitrary; a Linear(dim, dim)
    # stands in for it here (only the LayerNorm is prescribed by the module).
    w = jax.random.normal(k_w, (D, D), dtype=jnp.float32) * 0.02
    b = jax.random.normal(k_b, (D,), dtype=jnp.float32) * 0.02

    # block_rows=8 -> TM=8, multi-step row grid even at harness scale.
    out = prenorm_fn(x, gamma, beta, w, b, block_rows=8)
    jax.block_until_ready(out)

    ref32 = reference(x, gamma, beta, w, b)
    refbf = reference_bf16_mxu(x, gamma, beta, w, b)
    assert out.shape == ref32.shape, "shape mismatch"
    # Tight vs bf16-MXU-matched reference; loose (bf16-appropriate) vs pure f32.
    assert jnp.allclose(out, refbf, atol=2e-3, rtol=2e-3), "mismatch vs bf16 reference"
    assert jnp.allclose(out, ref32, atol=3e-2, rtol=3e-2), "mismatch vs f32 reference"

    print("KERNEL_OK")
</pallas_src>

<mosaic_0001>
module attributes {stable_mosaic.version = 11 : i64} {
  func.func @prenorm_kernel(%arg0: i32, %arg1: i32, %arg2: memref<8x128xf32, #tpu.memory_space<vmem>>, %arg3: memref<1x128xf32, #tpu.memory_space<vmem>>, %arg4: memref<1x128xf32, #tpu.memory_space<vmem>>, %arg5: memref<128x128xbf16, #tpu.memory_space<vmem>>, %arg6: memref<1x128xf32, #tpu.memory_space<vmem>>, %arg7: memref<8x128xf32, #tpu.memory_space<vmem>>) attributes {dimension_semantics = [#tpu.dimension_semantics<parallel>, #tpu.dimension_semantics<parallel>], iteration_bounds = array<i64: 2, 1>, scalar_prefetch = 0 : i64, scratch_operands = 0 : i64, tpu.core_type = #tpu.core_type<tc>, window_params = [{transform_indices = @transform_0, window_bounds = array<i64: 8, 128>}, {pipeline_mode = #tpu.pipeline_mode<synchronous>, transform_indices = @transform_1, window_bounds = array<i64: 1, 128>}, {pipeline_mode = #tpu.pipeline_mode<synchronous>, transform_indices = @transform_2, window_bounds = array<i64: 1, 128>}, {pipeline_mode = #tpu.pipeline_mode<synchronous>, transform_indices = @transform_3, window_bounds = array<i64: 128, 128>}, {pipeline_mode = #tpu.pipeline_mode<synchronous>, transform_indices = @transform_4, window_bounds = array<i64: 1, 128>}, {transform_indices = @transform_5, window_bounds = array<i64: 8, 128>}]} {
    %c0 = arith.constant 0 : index
    %c0_0 = arith.constant 0 : index
    %0 = vector.load %arg2[%c0, %c0_0] : memref<8x128xf32, #tpu.memory_space<vmem>>, vector<8x128xf32>
    %cst = arith.constant dense<0.000000e+00> : vector<8xf32>
    %1 = vector.multi_reduction <add>, %0, %cst [1] : vector<8x128xf32> to vector<8xf32>
    %2 = vector.shape_cast %1 : vector<8xf32> to vector<8x1xf32>
    %cst_1 = arith.constant 3.125000e-02 : f32
    %3 = vector.broadcast %cst_1 : f32 to vector<8x1xf32>
    %4 = arith.mulf %2, %3 : vector<8x1xf32>
    %5 = vector.broadcast %4 : vector<8x1xf32> to vector<8x128xf32>
    %6 = arith.subf %0, %5 : vector<8x128xf32>
    %7 = tpu.iota {dimensions = array<i32: 1>} : vector<8x128xi32>
    %c32_i32 = arith.constant 32 : i32
    %8 = vector.broadcast %c32_i32 : i32 to vector<8x128xi32>
    %9 = arith.cmpi slt, %7, %8 : vector<8x128xi32>
    %cst_2 = arith.constant 0.000000e+00 : f32
    %10 = vector.broadcast %cst_2 : f32 to vector<8x128xf32>
    %11 = arith.select %9, %6, %10 : vector<8x128xi1>, vector<8x128xf32>
    %12 = arith.mulf %11, %11 : vector<8x128xf32>
    %cst_3 = arith.constant dense<0.000000e+00> : vector<8xf32>
    %13 = vector.multi_reduction <add>, %12, %cst_3 [1] : vector<8x128xf32> to vector<8xf32>
    %14 = vector.shape_cast %13 : vector<8xf32> to vector<8x1xf32>
    %cst_4 = arith.constant 3.125000e-02 : f32
    %15 = vector.broadcast %cst_4 : f32 to vector<8x1xf32>
    %16 = arith.mulf %14, %15 : vector<8x1xf32>
    %cst_5 = arith.constant 9.99999974E-6 : f32
    %17 = vector.broadcast %cst_5 : f32 to vector<8x1xf32>
    %18 = arith.addf %16, %17 : vector<8x1xf32>
    %19 = math.rsqrt %18 : vector<8x1xf32>
    %c0_6 = arith.constant 0 : index
    %c0_7 = arith.constant 0 : index
    %20 = vector.load %arg3[%c0_6, %c0_7] : memref<1x128xf32, #tpu.memory_space<vmem>>, vector<1x128xf32>
    %c0_8 = arith.constant 0 : index
    %c0_9 = arith.constant 0 : index
    %21 = vector.load %arg4[%c0_8, %c0_9] : memref<1x128xf32, #tpu.memory_space<vmem>>, vector<1x128xf32>
    %22 = vector.broadcast %19 : vector<8x1xf32> to vector<8x128xf32>
    %23 = arith.mulf %11, %22 : vector<8x128xf32>
    %24 = vector.broadcast %20 : vector<1x128xf32> to vector<8x128xf32>
    %25 = arith.mulf %23, %24 : vector<8x128xf32>
    %26 = vector.broadcast %21 : vector<1x128xf32> to vector<8x128xf32>
    %27 = arith.addf %25, %26 : vector<8x128xf32>
    %28 = arith.truncf %27 : vector<8x128xf32> to vector<8x128xbf16>
    %c0_10 = arith.constant 0 : index
    %c0_11 = arith.constant 0 : index
    %29 = vector.load %arg5[%c0_10, %c0_11] : memref<128x128xbf16, #tpu.memory_space<vmem>>, vector<128x128xbf16>
    %cst_12 = arith.constant dense<0.000000e+00> : vector<8x128xf32>
    %30 = tpu.matmul %28, %29, %cst_12 {dimension_numbers = #tpu.dot_dimension_numbers<[1], [0], [0], [1], [0, 0, 1, 1], [], []>} : vector<8x128xbf16>, vector<128x128xbf16>, vector<8x128xf32> -> vector<8x128xf32>
    %c0_13 = arith.constant 0 : index
    %c0_14 = arith.constant 0 : index
    %31 = vector.load %arg6[%c0_13, %c0_14] : memref<1x128xf32, #tpu.memory_space<vmem>>, vector<1x128xf32>
    %32 = vector.broadcast %31 : vector<1x128xf32> to vector<8x128xf32>
    %33 = arith.addf %30, %32 : vector<8x128xf32>
    %c0_15 = arith.constant 0 : index
    %c0_16 = arith.constant 0 : index
    %34 = vector.load %arg7[%c0_15, %c0_16] : memref<8x128xf32, #tpu.memory_space<vmem>>, vector<8x128xf32>
    tpu.vector_store %arg7[%c0_15, %c0_16], %33 {strides = array<i32>} : memref<8x128xf32, #tpu.memory_space<vmem>>, vector<8x128xf32>,
    return
  }
  func.func @transform_0(%arg0: i32, %arg1: i32) -> (i32, i32) {
    %c0_i32 = arith.constant 0 : i32
    %c0_i32_0 = arith.constant 0 : i32
    return %arg0, %c0_i32 : i32, i32
  }
  func.func @transform_1(%arg0: i32, %arg1: i32) -> (i32, i32) {
    %c0_i32 = arith.constant 0 : i32
    %c0_i32_0 = arith.constant 0 : i32
    %c0_i32_1 = arith.constant 0 : i32
    return %c0_i32, %c0_i32_0 : i32, i32
  }
  func.func @transform_2(%arg0: i32, %arg1: i32) -> (i32, i32) {
    %c0_i32 = arith.constant 0 : i32
    %c0_i32_0 = arith.constant 0 : i32
    %c0_i32_1 = arith.constant 0 : i32
    return %c0_i32, %c0_i32_0 : i32, i32
  }
  func.func @transform_3(%arg0: i32, %arg1: i32) -> (i32, i32) {
    %c0_i32 = arith.constant 0 : i32
    %c0_i32_0 = arith.constant 0 : i32
    return %c0_i32, %arg1 : i32, i32
  }
  func.func @transform_4(%arg0: i32, %arg1: i32) -> (i32, i32) {
    %c0_i32 = arith.constant 0 : i32
    %c0_i32_0 = arith.constant 0 : i32
    return %c0_i32, %arg1 : i32, i32
  }
  func.func @transform_5(%arg0: i32, %arg1: i32) -> (i32, i32) {
    %c0_i32 = arith.constant 0 : i32
    return %arg0, %arg1 : i32, i32
  }
}

module attributes {stable_mosaic.version = 11 : i64} {
  func.func @prenorm_kernel(%arg0: i32, %arg1: i32, %arg2: memref<8x128xf32, #tpu.memory_space<vmem>>, %arg3: memref<1x128xf32, #tpu.memory_space<vmem>>, %arg4: memref<1x128xf32, #tpu.memory_space<vmem>>, %arg5: memref<128x128xbf16, #tpu.memory_space<vmem>>, %arg6: memref<1x128xf32, #tpu.memory_space<vmem>>, %arg7: memref<8x128xf32, #tpu.memory_space<vmem>>) attributes {dimension_semantics = [#tpu.dimension_semantics<parallel>, #tpu.dimension_semantics<parallel>], iteration_bounds = array<i64: 2, 1>, scalar_prefetch = 0 : i64, scratch_operands = 0 : i64, tpu.core_type = #tpu.core_type<tc>, window_params = [{transform_indices = @transform_0, window_bounds = array<i64: 8, 128>}, {pipeline_mode = #tpu.pipeline_mode<synchronous>, transform_indices = @transform_1, window_bounds = array<i64: 1, 128>}, {pipeline_mode = #tpu.pipeline_mode<synchronous>, transform_indices = @transform_2, window_bounds = array<i64: 1, 128>}, {transform_indices = @transform_3, window_bounds = array<i64: 128, 128>}, {transform_indices = @transform_4, window_bounds = array<i64: 1, 128>}, {transform_indices = @transform_5, window_bounds = array<i64: 8, 128>}]} {
    %c0 = arith.constant 0 : index
    %c0_0 = arith.constant 0 : index
    %0 = vector.load %arg2[%c0, %c0_0] : memref<8x128xf32, #tpu.memory_space<vmem>>, vector<8x128xf32>
    %cst = arith.constant dense<0.000000e+00> : vector<8xf32>
    %1 = vector.multi_reduction <add>, %0, %cst [1] : vector<8x128xf32> to vector<8xf32>
    %2 = vector.shape_cast %1 : vector<8xf32> to vector<8x1xf32>
    %cst_1 = arith.constant 3.125000e-02 : f32
    %3 = vector.broadcast %cst_1 : f32 to vector<8x1xf32>
    %4 = arith.mulf %2, %3 : vector<8x1xf32>
    %5 = vector.broadcast %4 : vector<8x1xf32> to vector<8x128xf32>
    %6 = arith.subf %0, %5 : vector<8x128xf32>
    %7 = tpu.iota {dimensions = array<i32: 1>} : vector<8x128xi32>
    %c32_i32 = arith.constant 32 : i32
    %8 = vector.broadcast %c32_i32 : i32 to vector<8x128xi32>
    %9 = arith.cmpi slt, %7, %8 : vector<8x128xi32>
    %cst_2 = arith.constant 0.000000e+00 : f32
    %10 = vector.broadcast %cst_2 : f32 to vector<8x128xf32>
    %11 = arith.select %9, %6, %10 : vector<8x128xi1>, vector<8x128xf32>
    %12 = arith.mulf %11, %11 : vector<8x128xf32>
    %cst_3 = arith.constant dense<0.000000e+00> : vector<8xf32>
    %13 = vector.multi_reduction <add>, %12, %cst_3 [1] : vector<8x128xf32> to vector<8xf32>
    %14 = vector.shape_cast %13 : vector<8xf32> to vector<8x1xf32>
    %cst_4 = arith.constant 3.125000e-02 : f32
    %15 = vector.broadcast %cst_4 : f32 to vector<8x1xf32>
    %16 = arith.mulf %14, %15 : vector<8x1xf32>
    %cst_5 = arith.constant 9.99999974E-6 : f32
    %17 = vector.broadcast %cst_5 : f32 to vector<8x1xf32>
    %18 = arith.addf %16, %17 : vector<8x1xf32>
    %19 = math.rsqrt %18 : vector<8x1xf32>
    %c0_6 = arith.constant 0 : index
    %c0_7 = arith.constant 0 : index
    %20 = vector.load %arg3[%c0_6, %c0_7] : memref<1x128xf32, #tpu.memory_space<vmem>>, vector<1x128xf32>
    %c0_8 = arith.constant 0 : index
    %c0_9 = arith.constant 0 : index
    %21 = vector.load %arg4[%c0_8, %c0_9] : memref<1x128xf32, #tpu.memory_space<vmem>>, vector<1x128xf32>
    %22 = vector.broadcast %19 : vector<8x1xf32> to vector<8x128xf32>
    %23 = arith.mulf %11, %22 : vector<8x128xf32>
    %24 = vector.broadcast %20 : vector<1x128xf32> to vector<8x128xf32>
    %25 = arith.mulf %23, %24 : vector<8x128xf32>
    %26 = vector.broadcast %21 : vector<1x128xf32> to vector<8x128xf32>
    %27 = arith.addf %25, %26 : vector<8x128xf32>
    %28 = arith.truncf %27 : vector<8x128xf32> to vector<8x128xbf16>
    %c0_10 = arith.constant 0 : index
    %c0_11 = arith.constant 0 : index
    %29 = vector.load %arg5[%c0_10, %c0_11] : memref<128x128xbf16, #tpu.memory_space<vmem>>, vector<128x128xbf16>
    %cst_12 = arith.constant dense<0.000000e+00> : vector<8x128xf32>
    %30 = tpu.matmul %28, %29, %cst_12 {dimension_numbers = #tpu.dot_dimension_numbers<[1], [0], [0], [1], [0, 0, 1, 1], [], []>} : vector<8x128xbf16>, vector<128x128xbf16>, vector<8x128xf32> -> vector<8x128xf32>
    %c0_13 = arith.constant 0 : index
    %c0_14 = arith.constant 0 : index
    %31 = vector.load %arg6[%c0_13, %c0_14] : memref<1x128xf32, #tpu.memory_space<vmem>>, vector<1x128xf32>
    %32 = vector.broadcast %31 : vector<1x128xf32> to vector<8x128xf32>
    %33 = arith.addf %30, %32 : vector<8x128xf32>
    %c0_15 = arith.constant 0 : index
    %c0_16 = arith.constant 0 : index
    %34 = vector.load %arg7[%c0_15, %c0_16] : memref<8x128xf32, #tpu.memory_space<vmem>>, vector<8x128xf32>
    tpu.vector_store %arg7[%c0_15, %c0_16], %33 {strides = array<i32>} : memref<8x128xf32, #tpu.memory_space<vmem>>, vector<8x128xf32>,
    return
  }
  func.func @transform_0(%arg0: i32, %arg1: i32) -> (i32, i32) {
    %c0_i32 = arith.constant 0 : i32
    %c0_i32_0 = arith.constant 0 : i32
    return %arg0, %c0_i32 : i32, i32
  }
  func.func @transform_1(%arg0: i32, %arg1: i32) -> (i32, i32) {
    %c0_i32 = arith.constant 0 : i32
    %c0_i32_0 = arith.constant 0 : i32
    %c0_i32_1 = arith.constant 0 : i32
    return %c0_i32, %c0_i32_0 : i32, i32
  }
  func.func @transform_2(%arg0: i32, %arg1: i32) -> (i32, i32) {
    %c0_i32 = arith.constant 0 : i32
    %c0_i32_0 = arith.constant 0 : i32
    %c0_i32_1 = arith.constant 0 : i32
    return %c0_i32, %c0_i32_0 : i32, i32
  }
  func.func @transform_3(%arg0: i32, %arg1: i32) -> (i32, i32) {
    %c0_i32 = arith.constant 0 : i32
    %c0_i32_0 = arith.constant 0 : i32
    return %c0_i32, %arg1 : i32, i32
  }
  func.func @transform_4(%arg0: i32, %arg1: i32) -> (i32, i32) {
    %c0_i32 = arith.constant 0 : i32
    %c0_i32_0 = arith.constant 0 : i32
    return %c0_i32, %arg1 : i32, i32
  }
  func.func @transform_5(%arg0: i32, %arg1: i32) -> (i32, i32) {
    %c0_i32 = arith.constant 0 : i32
    return %arg0, %arg1 : i32, i32
  }
}

</mosaic_0001>

<bundles_post_ra>
// kernel: tpu_custom_call.1
= control target key start
LH: loop header
LB: loop body
LE: loop exit
PB: predicated region body
PF: predicated region fallthrough
CT: control target
= control target key end

     0   :  { %s1066_s0 = inlined_call_operand.hbm [shape: f32[16,128], index: 0, kind: input, shape index: {}]   ;;  %s1067_s1 = inlined_call_operand.vmem [shape: f32[1,128], index: 1, kind: input, shape index: {}]   ;;  %s1068_s2 = inlined_call_operand.vmem [shape: f32[1,128], index: 2, kind: input, shape index: {}]   ;;  %s1069_s3 = inlined_call_operand.hbm [shape: bf16[128,128], index: 3, kind: input, shape index: {}]   ;;  %s1070_s4 = inlined_call_operand.vmem [shape: f32[1,128], index: 4, kind: input, shape index: {}]   ;;  %s1071_s5 = inlined_call_operand.hbm [shape: f32[16,128], index: 5, kind: output, shape index: {}]  }
   0x1   :  { %1074 = sst [smem:[#allocation12_spill]] %s1069_s3 }
   0x2   :  { %10 = vsyncpa [#allocation3], 0 }
   0x3   :  { %12 = vsyncpa [#allocation3 + $0x1], 0 }
   0x4   :  { %13 = vsyncpa [#allocation6], 0 }
   0x5   :  { %14 = vsyncpa [#allocation4], 0 }
   0x6   :  { %16 = vsyncpa [#allocation4 + $0x1], 0  ;;  %s874_s18 = smov 0   ;;  %s876_s19 = smov 0  }
   0x7   :  { %s878_s20 = smov 0   ;;  %s880_s21 = smov 0  }
   0x8   :  { %s882_s22 = smov 0   ;;  %s884_s23 = smov 0  }
   0x9 LB: > { %s554_s24 = sadd.s32 4294967295, %s835_s23   ;;  %s555_s25 = sadd.s32 4294967294, %s835_s23   ;;  %s835_s23 = sphi %s884_s23, %s22_s23   ;;  %s831_s22 = sphi %s882_s22, %s1094_s22   ;;  %s827_s21 = sphi %s880_s21, %s1093_s21   ;;  %s823_s20 = sphi %s878_s20, %s1092_s20   ;;  %s819_s19 = sphi %s876_s19, %s1091_s19   ;;  %s815_s18 = sphi %s874_s18, %s1090_s18  }
   0xa   : > { %p54_p0 = scmp.ne.s32.totalorder %s819_s19, %s815_s18  ;;  %p908_p1 = scmp.eq.s32.totalorder %s554_s24, 0 }
   0xb   : > { %p912_p2 = scmp.eq.s32.totalorder %s554_s24, 1  ;;  %p180_p3 = scmp.eq.s32.totalorder %s555_s25, 1 }
   0xc   : > { %p918_p4 = por %p908_p1, %p54_p0  ;;  %p556_p5 = scmp.ge.s32.totalorder %s835_s23, 1 }
   0xd   : > { %p923_p6 = por %p180_p3, %p54_p0  ;;  %p187_p7 = scmp.lt.s32.totalorder %s835_s23, 3 }
   0xe   : > { %s1077_s28 = scalar_select %p918_p4, 1, 0 }
   0xf   : > { %s1078_s29 = scalar_select %p923_p6, 1, 0 }
  0x10   : > { %p928_p8 = pnand %p556_p5, %p187_p7  ;;  %s837_s6 = smov [#allocation5]  }
  0x11   : > { %s207_s7 = sshll.u32 %s837_s6, 4  ;;  %s34_s9 = sadd.s32 1, %s831_s22  ;;  %s208_s7 = int_to_ptr.vmem [resolvable:$true] %s207_s7 }
  0x12   : > { %p618_p9 = pneg %p928_p8  ;;  %s708_s10 = scalar_lea.vmem %s208_s7, 1024 }
  0x13   : > { %p709_p13 = scmp.ne.s32.totalorder %s208_s7, %s708_s10  ;;  %p716_p5 = scmp.lt.s32.totalorder %s208_s7, %s208_s7 }
  0x14   : > { %p937_p11 = pnand %p618_p9, %p908_p1  ;;  %p717_p7 = scmp.lt.s32.totalorder %s708_s10, %s708_s10 }
  0x16   : > { %p699_p12 = pneg %p937_p11  ;;  %p718_p6 = por %p717_p7, %p716_p5 }
  0x18   : > { %p711_p0 = pnand %p709_p13, %p699_p12 }
  0x1a   : > { %p712_p3 = pneg %p711_p0 }
  0x1c   : > { %p719_p4 = pnand %p718_p6, %p712_p3 }
  0x1e   : > { %722 = shalt.err (!%p719_p4)
}
  0x1f   : > { %s838_s11 = smov 64   ;;  %s839_s12 = smov 4  }
  0x20   : > { %s1081_s3 = sld [smem:[#allocation12_spill]]  ;;  %p36_p6 = scmp.ge.s32.totalorder %s34_s9, 2 }
  0x21   : > { %s41_s15 = sadd.s32 1, %s823_s20  ;;  %p48_p4 = scmp.ne.s32.totalorder %s823_s20, %s819_s19 }
  0x22   : > { %p49_p9 = scmp.eq.s32.totalorder %s835_s23, 0  ;;  %s1096_s9 = smov (%p36_p6, %s34_s9), 0 }
  0x23   : > { %1082 = sst [smem:[#allocation11_spill]] %s1096_s9  ;;  %p961_p13 = por %p912_p2, %p48_p4 }
  0x24   : > { %p955_p12 = por %p49_p9, %p48_p4  ;;  %s38_s24 = ssub.s32 %s831_s22, %s1096_s9 }
  0x25   : > { %p631_p0 = scmp.lt.s32.totalorder %s835_s23, 2  ;;  %s227_s25 = sand.u32 1, %s823_s20  }
  0x26   : > { %621 = dma.hbm_to_vmem [thread:$0]  (!%p937_p11), %s1081_s3, 1024, %s208_s7, [#allocation6], %s838_s11, %s838_s11, %s839_s12  }
  0x27   : > { %p39_p11 = scmp.eq.s32.totalorder %s38_s24, 0  ;;  %s560_s6 = sshll.u32 %s227_s25, 3 }
  0x28   : > { %s561_s8 = sshll.u32 %s831_s22, 7  ;;  %s231_s13 = scalar_lea.vmem [#allocation2], %s560_s6 }
  0x29   : > { %s970_s7 = scalar_select %p39_p11, %s823_s20, %s41_s15  }
  0x2a   : > { %s236_s12 = scalar_lea.hbm %s1066_s0, %s561_s8  ;;  %s238_s14 = sshll.u32 %s231_s13, 4  ;;  %s239_s14 = int_to_ptr.vmem [resolvable:$true] %s238_s14 }
  0x2b   : > { %p978_p2 = pnand %p631_p0, %p955_p12  ;;  %s228_s3 = scalar_lea.sflag [#allocation3], %s227_s25 }
  0x2c   : > { %s736_s24 = scalar_lea.vmem %s239_s14, 128  ;;  %s840_s15 = smov [#allocation2]  }
  0x2d   : > { %p725_p3 = pneg %p978_p2  ;;  %p737_p5 = scmp.ne.s32.totalorder %s239_s14, %s736_s24 }
  0x2e   : > { %s741_s9 = sshll.u32 %s840_s15, 4  ;;  %s742_s9 = int_to_ptr.vmem [resolvable:$false] %s741_s9 }
  0x2f   : > { %p739_p7 = pnand %p737_p5, %p725_p3  ;;  %s743_s8 = scalar_lea.vmem %s742_s9, 256 }
  0x30   : > { %p744_p4 = scmp.lt.s32.totalorder %s239_s14, %s742_s9  ;;  %p745_p9 = scmp.lt.s32.totalorder %s743_s8, %s736_s24 }
  0x31   : > { %p740_p6 = pneg %p739_p7 }
  0x32   : > { %p746_p11 = por %p745_p9, %p744_p4 }
  0x34   : > { %p747_p10 = pnand %p746_p11, %p740_p6 }
  0x36   : > { %750 = shalt.err (!%p747_p10)
}
  0x37   : > { %625 = dma.hbm_to_vmem [thread:$0]  (!%p978_p2), %s236_s12, 128, %s239_s14, %s228_s3  }
  0x38   : > { %247 = sbr.rel (%p928_p8) target bundleno = 583 (0x247), region = 40  ;;  %s989_s16 = sand.u32 (!%p928_p8), 1, %s819_s19  }
  0x39   : > { %s563_s25 = sshll.u32 (!%p928_p8), %s989_s16, 3  ;;  %s250_s6 = scalar_lea.sflag (!%p928_p8), [#allocation3], %s989_s16 }
  0x3a   : > { %s253_s9 = scalar_lea.vmem (!%p928_p8), [#allocation2], %s563_s25  ;;  %p1086_p12 = scmp.ne.s32.totalorder (!%p928_p8), %s1077_s28, 0 }
  0x3d   : > { %802 = dma.done.wait (%p1086_p12), %s250_s6, 128  }
  0x3e   : > { %804 = vsyncadd (%p1086_p12), %s250_s6, 4294967168 }
  0x3f   : > { %806 = dma.done.wait (%p908_p1), [#allocation6], 1024  }
  0x40   : > { %808 = vsyncadd (%p908_p1), [#allocation6], 4294966272  ;;  %v291_v0 = vld [vmem:[%s253_s9] sm:$0xff]  ;;  %v841_v2 = vmov 0.0   ;;  %v296_v4 = vlaneseq  ;;  %v689_v11 = vld [vmem:[#allocation5 + $0x28] sm:$0xff]   ;;  %vm842_vm1 = vmmov 0  }
  0x41   : > { %292 = vadd.xlane.f32.xlu0 %v291_v0  ;;  %v687_v1 = vld [vmem:[#allocation5 + $0x38] sm:$0xff]   ;;  %590 = vmatprep.subr.bf16.mxu0 %v841_v2  ;;  %v688_v3 = vld [vmem:[#allocation5 + $0x30] sm:$0xff]   ;;  %v690_v12 = vld [vmem:[#allocation5 + $0x20] sm:$0xff]   ;;  %s578_s12 = sshll.u32 %s827_s21, 7  ;;  %s286_s13 = scalar_lea.vmem [#allocation7], %s563_s25 }
  0x42   : > { %591 = vmatpush3.bf16.msra.mxu0 %v687_v1  ;;  %v297_v5 = vand.u32 127, %v296_v4  ;;  %606 = vmatprep.mubr.msk.bf16.mxu0 %vm842_vm1, %v841_v2  ;;  %v691_v13 = vld [vmem:[#allocation5 + $0x18] sm:$0xff]   ;;  %v692_v14 = vld [vmem:[#allocation5 + $0x10] sm:$0xff]   ;;  %v693_v15 = vld [vmem:[#allocation5 + $0x8] sm:$0xff]   ;;  %s451_s14 = sshll.u32 %s286_s13, 4  ;;  %s1018_s15 = scalar_lea.hbm %s1071_s5, %s578_s12  ;;  %s1020_s14 = int_to_ptr.vmem [resolvable:$true] %s451_s14 }
  0x43   : > { %592 = vmatprep.subr.bf16.mxu0 %v841_v2  ;;  %v694_v16 = vld [vmem:[#allocation5] sm:$0xff]   ;;  %v566_v21 = vld [vmem:[%s1067_s1] ss:$0 sm:$0xff]  ;;  %s437_s8 = scalar_lea.sflag [#allocation4], %s989_s16  ;;  %s751_s21 = scalar_lea.vmem %s1020_s14, 128 }
  0x44   : > { %vm298_vm0 = vcmp.lt.s32.totalorder %v297_v5, 32  ;;  %v567_v23 = vld [vmem:[%s1068_s2] ss:$0 sm:$0xff]  ;;  %p752_p1 = scmp.ne.s32.totalorder %s1020_s14, %s751_s21  ;;  %s843_s25 = smov [#allocation7]  }
  0x45   : > { %v568_v27 = vld [vmem:[%s1070_s4] ss:$0 sm:$0xff]  ;;  %s755_s6 = sshll.u32 %s843_s25, 4  ;;  %s756_s6 = int_to_ptr.vmem [resolvable:$false] %s755_s6 }
  0x46   : > { %593 = vmatpush3.bf16.msra.mxu0 %v688_v3  ;;  %p753_p8 = pnand %p752_p1, %p961_p13  ;;  %s757_s9 = scalar_lea.vmem %s756_s6, 256 }
  0x47   : > { %594 = vmatprep.subr.bf16.mxu0 %v841_v2  ;;  %p758_p0 = scmp.lt.s32.totalorder %s1020_s14, %s756_s6  ;;  %p759_p2 = scmp.lt.s32.totalorder %s757_s9, %s751_s21 }
  0x48   : > { %p754_p10 = pneg %p753_p8 }
  0x49   : > { %p760_p3 = por %p759_p2, %p758_p0 }
  0x4a   : > { %595 = vmatpush3.bf16.msra.mxu0 %v689_v11 }
  0x4b   : > { %596 = vmatprep.subr.bf16.mxu0 %v841_v2  ;;  %p761_p5 = pnand %p760_p3, %p754_p10 }
  0x4e   : > { %597 = vmatpush3.bf16.msra.mxu0 %v690_v12 }
  0x4f   : > { %598 = vmatprep.subr.bf16.mxu0 %v841_v2 }
  0x52   : > { %599 = vmatpush3.bf16.msra.mxu0 %v691_v13 }
  0x53   : > { %600 = vmatprep.subr.bf16.mxu0 %v841_v2 }
  0x56   : > { %601 = vmatpush3.bf16.msra.mxu0 %v692_v14 }
  0x57   : > { %602 = vmatprep.subr.bf16.mxu0 %v841_v2 }
  0x5a   : > { %603 = vmatpush3.bf16.msra.mxu0 %v693_v15 }
  0x5b   : > { %604 = vmatprep.subr.bf16.mxu0 %v841_v2 }
  0x5e   : > { %605 = vmatpush3.bf16.msra.mxu0 %v694_v16 }
  0xca   : > { %v293_v6 = vpop.xlane.xlu0 %292 }
  0xcb   : > { %v294_v7 = vmul.f32 0.03125, %v293_v6 }
  0xcd   : > { %v295_v8 = vsub.f32 %v291_v0, %v294_v7 }
  0xcf   : > { %v299_v9 = vsel %vm298_vm0, %v295_v8, 0.0 }
  0xd0   : > { %v300_v10 = vmul.f32 %v299_v9, %v299_v9 }
  0xd2   : > { %301 = vadd.xlane.f32.xlu0 %v300_v10 }
 0x15b   : > { %v302_v17 = vpop.xlane.xlu0 %301 }
 0x15c   : > { %v303_v18 = vmul.f32 0.03125, %v302_v17 }
 0x15e   : > { %v304_v19 = vadd.f32 1e-05, %v303_v18 }
 0x160   : > { %695 = vrsqrt.f32 %v304_v19 }
 0x16d   : > { %v696_v20 = vpop.eup %695 }
 0x16e   : > { %v308_v22 = vmul.f32 %v696_v20, %v299_v9 }
 0x170   : > { %v315_v24 = vmul.f32 %v566_v21, %v308_v22 }
 0x172   : > { %v322_v25 = vadd.f32 %v567_v23, %v315_v24 }
 0x174   : > { %v323_v26 = vpack.c.bf16 %v322_v25, %v322_v25 }
 0x176   : > { %607 = vmatmul.mubr.bf16.vlgmr.msra.gmra.mxu0 %v323_v26 }
 0x236   : > { %v429_v28 = vpop.f32.mrf.mxu0 }
 0x237   : > { %v430_v29 = vadd.f32 %v568_v27, %v429_v28 }
 0x238   : > { %v608_v30 = vpop.f32.mrf.mxu0 }
 0x239   : > { %435 = vst [vmem:[%s286_s13] sm:$0xff] %v430_v29 }
 0x23a   : > { %v432_v31 = vpop.f32.mrf.mxu0 }
 0x23b   : > { %764 = shalt.err (!%p761_p5)
}
 0x23c   : > { %s765_s3 = scalar_lea.hbm %s1018_s15, 128  ;;  %s769_s28 = scalar_lea.hbm %s1071_s5, 256 }
 0x23d   : > { %p766_p7 = scmp.ne.s32.totalorder %s1018_s15, %s765_s3  ;;  %p770_p9 = scmp.lt.s32.totalorder %s1018_s15, %s1071_s5 }
 0x23e   : > { %p771_p11 = scmp.lt.s32.totalorder %s769_s28, %s765_s3 }
 0x23f   : > { %p767_p6 = pnand %p766_p7, %p961_p13 }
 0x240   : > { %p772_p12 = por %p771_p11, %p770_p9 }
 0x241   : > { %p768_p4 = pneg %p767_p6 }
 0x243   : > { %p773_p1 = pnand %p772_p12, %p768_p4 }
 0x245   : > { %776 = shalt.err (!%p773_p1)
}
 0x246   : > { %616 = dma.vmem_to_hbm [thread:$0]  (%p961_p13), %s1020_s14, 128, %s1018_s15, %s437_s8   ;;  %v609_v32 = vpop.f32.mrf.mxu0 }
 0x247 PF: > { %s463_s11 = sand.u32 1, %s815_s18   ;;  %p1087_p8 = scmp.ne.s32.totalorder %s1078_s29, 0 }
 0x248   : > { %p1088_p10 = scmp.ge.s32.totalorder %s835_s23, 2  ;;  %s464_s12 = scalar_lea.sflag [#allocation4], %s463_s11 }
 0x24a   : > { %p627_p0 = pnand %p1088_p10, %p1087_p8 }
 0x24c   : > { %p628_p2 = pneg %p627_p0 }
 0x24e   : > { %810 = dma.done.wait (%p628_p2), %s464_s12, 128  }
 0x24f   : > { %812 = vsyncadd (%p628_p2), %s464_s12, 4294967168  ;;  %s22_s23 = sadd.s32 1, %s835_s23   ;;  %s1089_s17 = sld [smem:[#allocation11_spill]] }
 0x250   : > { %p19_p3 = scmp.ge.s32.totalorder %s22_s23, 4   ;;  %s1090_s18 = smov %s819_s19 }
 0x251   : > { %s1091_s19 = smov %s823_s20  ;;  %s1092_s20 = smov %s970_s7 }
 0x252   : > { %s1093_s21 = smov %s831_s22  ;;  %21 = sbr.rel (!%p19_p3) target bundleno = 9 (0x9), region = 93 }
 0x255   : > { %s1094_s22 = smov %s1089_s17 }
 0x257   :  { %469 = vsyncpa [#allocation3], 1 }
 0x258   :  { %471 = vsyncpa [#allocation3 + $0x1], 1 }
 0x259   :  { %472 = vsyncpa [#allocation6], 1 }
 0x25a   :  { %473 = vsyncpa [#allocation4], 1 }
 0x25b   :  { %475 = vsyncpa [#allocation4 + $0x1], 1 }

// kernel: tpu_custom_call.1
= control target key start
LH: loop header
LB: loop body
LE: loop exit
PB: predicated region body
PF: predicated region fallthrough
CT: control target
= control target key end

     0   :  { %s1066_s0 = inlined_call_operand.hbm [shape: f32[16,128], index: 0, kind: input, shape index: {}]   ;;  %s1067_s1 = inlined_call_operand.vmem [shape: f32[1,128], index: 1, kind: input, shape index: {}]   ;;  %s1068_s2 = inlined_call_operand.vmem [shape: f32[1,128], index: 2, kind: input, shape index: {}]   ;;  %s1069_s3 = inlined_call_operand.hbm [shape: bf16[128,128], index: 3, kind: input, shape index: {}]   ;;  %s1070_s4 = inlined_call_operand.vmem [shape: f32[1,128], index: 4, kind: input, shape index: {}]   ;;  %s1071_s5 = inlined_call_operand.hbm [shape: f32[16,128], index: 5, kind: output, shape index: {}]  }
   0x1   :  { %1074 = sst [smem:[#allocation12_spill]] %s1069_s3 }
   0x2   :  { %10 = vsyncpa [#allocation3], 0 }
   0x3   :  { %12 = vsyncpa [#allocation3 + $0x1], 0 }
   0x4   :  { %13 = vsyncpa [#allocation6], 0 }
   0x5   :  { %14 = vsyncpa [#allocation4], 0 }
   0x6   :  { %16 = vsyncpa [#allocation4 + $0x1], 0  ;;  %s874_s18 = smov 0   ;;  %s876_s19 = smov 0  }
   0x7   :  { %s878_s20 = smov 0   ;;  %s880_s21 = smov 0  }
   0x8   :  { %s882_s22 = smov 0   ;;  %s884_s23 = smov 0  }
   0x9 LB: > { %s554_s24 = sadd.s32 4294967295, %s835_s23   ;;  %s555_s25 = sadd.s32 4294967294, %s835_s23   ;;  %s835_s23 = sphi %s884_s23, %s22_s23   ;;  %s831_s22 = sphi %s882_s22, %s1094_s22   ;;  %s827_s21 = sphi %s880_s21, %s1093_s21   ;;  %s823_s20 = sphi %s878_s20, %s1092_s20   ;;  %s819_s19 = sphi %s876_s19, %s1091_s19   ;;  %s815_s18 = sphi %s874_s18, %s1090_s18  }
   0xa   : > { %p54_p0 = scmp.ne.s32.totalorder %s819_s19, %s815_s18  ;;  %p908_p1 = scmp.eq.s32.totalorder %s554_s24, 0 }
   0xb   : > { %p912_p2 = scmp.eq.s32.totalorder %s554_s24, 1  ;;  %p180_p3 = scmp.eq.s32.totalorder %s555_s25, 1 }
   0xc   : > { %p918_p4 = por %p908_p1, %p54_p0  ;;  %p556_p5 = scmp.ge.s32.totalorder %s835_s23, 1 }
   0xd   : > { %p923_p6 = por %p180_p3, %p54_p0  ;;  %p187_p7 = scmp.lt.s32.totalorder %s835_s23, 3 }
   0xe   : > { %s1077_s28 = scalar_select %p918_p4, 1, 0 }
   0xf   : > { %s1078_s29 = scalar_select %p923_p6, 1, 0 }
  0x10   : > { %p928_p8 = pnand %p556_p5, %p187_p7  ;;  %s837_s6 = smov [#allocation5]  }
  0x11   : > { %s207_s7 = sshll.u32 %s837_s6, 4  ;;  %s34_s9 = sadd.s32 1, %s831_s22  ;;  %s208_s7 = int_to_ptr.vmem [resolvable:$true] %s207_s7 }
  0x12   : > { %p618_p9 = pneg %p928_p8  ;;  %s708_s10 = scalar_lea.vmem %s208_s7, 1024 }
  0x13   : > { %p709_p13 = scmp.ne.s32.totalorder %s208_s7, %s708_s10  ;;  %p716_p5 = scmp.lt.s32.totalorder %s208_s7, %s208_s7 }
  0x14   : > { %p937_p11 = pnand %p618_p9, %p908_p1  ;;  %p717_p7 = scmp.lt.s32.totalorder %s708_s10, %s708_s10 }
  0x16   : > { %p699_p12 = pneg %p937_p11  ;;  %p718_p6 = por %p717_p7, %p716_p5 }
  0x18   : > { %p711_p0 = pnand %p709_p13, %p699_p12 }
  0x1a   : > { %p712_p3 = pneg %p711_p0 }
  0x1c   : > { %p719_p4 = pnand %p718_p6, %p712_p3 }
  0x1e   : > { %722 = shalt.err (!%p719_p4)
}
  0x1f   : > { %s838_s11 = smov 64   ;;  %s839_s12 = smov 4  }
  0x20   : > { %s1081_s3 = sld [smem:[#allocation12_spill]]  ;;  %p36_p6 = scmp.ge.s32.totalorder %s34_s9, 2 }
  0x21   : > { %s41_s15 = sadd.s32 1, %s823_s20  ;;  %p48_p4 = scmp.ne.s32.totalorder %s823_s20, %s819_s19 }
  0x22   : > { %p49_p9 = scmp.eq.s32.totalorder %s835_s23, 0  ;;  %s1096_s9 = smov (%p36_p6, %s34_s9), 0 }
  0x23   : > { %1082 = sst [smem:[#allocation11_spill]] %s1096_s9  ;;  %p961_p13 = por %p912_p2, %p48_p4 }
  0x24   : > { %p955_p12 = por %p49_p9, %p48_p4  ;;  %s38_s24 = ssub.s32 %s831_s22, %s1096_s9 }
  0x25   : > { %p631_p0 = scmp.lt.s32.totalorder %s835_s23, 2  ;;  %s227_s25 = sand.u32 1, %s823_s20  }
  0x26   : > { %621 = dma.hbm_to_vmem [thread:$0]  (!%p937_p11), %s1081_s3, 1024, %s208_s7, [#allocation6], %s838_s11, %s838_s11, %s839_s12  }
  0x27   : > { %p39_p11 = scmp.eq.s32.totalorder %s38_s24, 0  ;;  %s560_s6 = sshll.u32 %s227_s25, 3 }
  0x28   : > { %s561_s8 = sshll.u32 %s831_s22, 7  ;;  %s231_s13 = scalar_lea.vmem [#allocation2], %s560_s6 }
  0x29   : > { %s970_s7 = scalar_select %p39_p11, %s823_s20, %s41_s15  }
  0x2a   : > { %s236_s12 = scalar_lea.hbm %s1066_s0, %s561_s8  ;;  %s238_s14 = sshll.u32 %s231_s13, 4  ;;  %s239_s14 = int_to_ptr.vmem [resolvable:$true] %s238_s14 }
  0x2b   : > { %p978_p2 = pnand %p631_p0, %p955_p12  ;;  %s228_s3 = scalar_lea.sflag [#allocation3], %s227_s25 }
  0x2c   : > { %s736_s24 = scalar_lea.vmem %s239_s14, 128  ;;  %s840_s15 = smov [#allocation2]  }
  0x2d   : > { %p725_p3 = pneg %p978_p2  ;;  %p737_p5 = scmp.ne.s32.totalorder %s239_s14, %s736_s24 }
  0x2e   : > { %s741_s9 = sshll.u32 %s840_s15, 4  ;;  %s742_s9 = int_to_ptr.vmem [resolvable:$false] %s741_s9 }
  0x2f   : > { %p739_p7 = pnand %p737_p5, %p725_p3  ;;  %s743_s8 = scalar_lea.vmem %s742_s9, 256 }
  0x30   : > { %p744_p4 = scmp.lt.s32.totalorder %s239_s14, %s742_s9  ;;  %p745_p9 = scmp.lt.s32.totalorder %s743_s8, %s736_s24 }
  0x31   : > { %p740_p6 = pneg %p739_p7 }
  0x32   : > { %p746_p11 = por %p745_p9, %p744_p4 }
  0x34   : > { %p747_p10 = pnand %p746_p11, %p740_p6 }
  0x36   : > { %750 = shalt.err (!%p747_p10)
}
  0x37   : > { %625 = dma.hbm_to_vmem [thread:$0]  (!%p978_p2), %s236_s12, 128, %s239_s14, %s228_s3  }
  0x38   : > { %247 = sbr.rel (%p928_p8) target bundleno = 583 (0x247), region = 40  ;;  %s989_s16 = sand.u32 (!%p928_p8), 1, %s819_s19  }
  0x39   : > { %s563_s25 = sshll.u32 (!%p928_p8), %s989_s16, 3  ;;  %s250_s6 = scalar_lea.sflag (!%p928_p8), [#allocation3], %s989_s16 }
  0x3a   : > { %s253_s9 = scalar_lea.vmem (!%p928_p8), [#allocation2], %s563_s25  ;;  %p1086_p12 = scmp.ne.s32.totalorder (!%p928_p8), %s1077_s28, 0 }
  0x3d   : > { %802 = dma.done.wait (%p1086_p12), %s250_s6, 128  }
  0x3e   : > { %804 = vsyncadd (%p1086_p12), %s250_s6, 4294967168 }
  0x3f   : > { %806 = dma.done.wait (%p908_p1), [#allocation6], 1024  }
  0x40   : > { %808 = vsyncadd (%p908_p1), [#allocation6], 4294966272  ;;  %v291_v0 = vld [vmem:[%s253_s9] sm:$0xff]  ;;  %v841_v2 = vmov 0.0   ;;  %v296_v4 = vlaneseq  ;;  %v689_v11 = vld [vmem:[#allocation5 + $0x28] sm:$0xff]   ;;  %vm842_vm1 = vmmov 0  }
  0x41   : > { %292 = vadd.xlane.f32.xlu0 %v291_v0  ;;  %v687_v1 = vld [vmem:[#allocation5 + $0x38] sm:$0xff]   ;;  %590 = vmatprep.subr.bf16.mxu0 %v841_v2  ;;  %v688_v3 = vld [vmem:[#allocation5 + $0x30] sm:$0xff]   ;;  %v690_v12 = vld [vmem:[#allocation5 + $0x20] sm:$0xff]   ;;  %s578_s12 = sshll.u32 %s827_s21, 7  ;;  %s286_s13 = scalar_lea.vmem [#allocation7], %s563_s25 }
  0x42   : > { %591 = vmatpush3.bf16.msra.mxu0 %v687_v1  ;;  %v297_v5 = vand.u32 127, %v296_v4  ;;  %606 = vmatprep.mubr.msk.bf16.mxu0 %vm842_vm1, %v841_v2  ;;  %v691_v13 = vld [vmem:[#allocation5 + $0x18] sm:$0xff]   ;;  %v692_v14 = vld [vmem:[#allocation5 + $0x10] sm:$0xff]   ;;  %v693_v15 = vld [vmem:[#allocation5 + $0x8] sm:$0xff]   ;;  %s451_s14 = sshll.u32 %s286_s13, 4  ;;  %s1018_s15 = scalar_lea.hbm %s1071_s5, %s578_s12  ;;  %s1020_s14 = int_to_ptr.vmem [resolvable:$true] %s451_s14 }
  0x43   : > { %592 = vmatprep.subr.bf16.mxu0 %v841_v2  ;;  %v694_v16 = vld [vmem:[#allocation5] sm:$0xff]   ;;  %v566_v21 = vld [vmem:[%s1067_s1] ss:$0 sm:$0xff]  ;;  %s437_s8 = scalar_lea.sflag [#allocation4], %s989_s16  ;;  %s751_s21 = scalar_lea.vmem %s1020_s14, 128 }
  0x44   : > { %vm298_vm0 = vcmp.lt.s32.totalorder %v297_v5, 32  ;;  %v567_v23 = vld [vmem:[%s1068_s2] ss:$0 sm:$0xff]  ;;  %p752_p1 = scmp.ne.s32.totalorder %s1020_s14, %s751_s21  ;;  %s843_s25 = smov [#allocation7]  }
  0x45   : > { %v568_v27 = vld [vmem:[%s1070_s4] ss:$0 sm:$0xff]  ;;  %s755_s6 = sshll.u32 %s843_s25, 4  ;;  %s756_s6 = int_to_ptr.vmem [resolvable:$false] %s755_s6 }
  0x46   : > { %593 = vmatpush3.bf16.msra.mxu0 %v688_v3  ;;  %p753_p8 = pnand %p752_p1, %p961_p13  ;;  %s757_s9 = scalar_lea.vmem %s756_s6, 256 }
  0x47   : > { %594 = vmatprep.subr.bf16.mxu0 %v841_v2  ;;  %p758_p0 = scmp.lt.s32.totalorder %s1020_s14, %s756_s6  ;;  %p759_p2 = scmp.lt.s32.totalorder %s757_s9, %s751_s21 }
  0x48   : > { %p754_p10 = pneg %p753_p8 }
  0x49   : > { %p760_p3 = por %p759_p2, %p758_p0 }
  0x4a   : > { %595 = vmatpush3.bf16.msra.mxu0 %v689_v11 }
  0x4b   : > { %596 = vmatprep.subr.bf16.mxu0 %v841_v2  ;;  %p761_p5 = pnand %p760_p3, %p754_p10 }
  0x4e   : > { %597 = vmatpush3.bf16.msra.mxu0 %v690_v12 }
  0x4f   : > { %598 = vmatprep.subr.bf16.mxu0 %v841_v2 }
  0x52   : > { %599 = vmatpush3.bf16.msra.mxu0 %v691_v13 }
  0x53   : > { %600 = vmatprep.subr.bf16.mxu0 %v841_v2 }
  0x56   : > { %601 = vmatpush3.bf16.msra.mxu0 %v692_v14 }
  0x57   : > { %602 = vmatprep.subr.bf16.mxu0 %v841_v2 }
  0x5a   : > { %603 = vmatpush3.bf16.msra.mxu0 %v693_v15 }
  0x5b   : > { %604 = vmatprep.subr.bf16.mxu0 %v841_v2 }
  0x5e   : > { %605 = vmatpush3.bf16.msra.mxu0 %v694_v16 }
  0xca   : > { %v293_v6 = vpop.xlane.xlu0 %292 }
  0xcb   : > { %v294_v7 = vmul.f32 0.03125, %v293_v6 }
  0xcd   : > { %v295_v8 = vsub.f32 %v291_v0, %v294_v7 }
  0xcf   : > { %v299_v9 = vsel %vm298_vm0, %v295_v8, 0.0 }
  0xd0   : > { %v300_v10 = vmul.f32 %v299_v9, %v299_v9 }
  0xd2   : > { %301 = vadd.xlane.f32.xlu0 %v300_v10 }
 0x15b   : > { %v302_v17 = vpop.xlane.xlu0 %301 }
 0x15c   : > { %v303_v18 = vmul.f32 0.03125, %v302_v17 }
 0x15e   : > { %v304_v19 = vadd.f32 1e-05, %v303_v18 }
 0x160   : > { %695 = vrsqrt.f32 %v304_v19 }
 0x16d   : > { %v696_v20 = vpop.eup %695 }
 0x16e   : > { %v308_v22 = vmul.f32 %v696_v20, %v299_v9 }
 0x170   : > { %v315_v24 = vmul.f32 %v566_v21, %v308_v22 }
 0x172   : > { %v322_v25 = vadd.f32 %v567_v23, %v315_v24 }
 0x174   : > { %v323_v26 = vpack.c.bf16 %v322_v25, %v322_v25 }
 0x176   : > { %607 = vmatmul.mubr.bf16.vlgmr.msra.gmra.mxu0 %v323_v26 }
 0x236   : > { %v429_v28 = vpop.f32.mrf.mxu0 }
 0x237   : > { %v430_v29 = vadd.f32 %v568_v27, %v429_v28 }
 0x238   : > { %v608_v30 = vpop.f32.mrf.mxu0 }
 0x239   : > { %435 = vst [vmem:[%s286_s13] sm:$0xff] %v430_v29 }
 0x23a   : > { %v432_v31 = vpop.f32.mrf.mxu0 }
 0x23b   : > { %764 = shalt.err (!%p761_p5)
}
 0x23c   : > { %s765_s3 = scalar_lea.hbm %s1018_s15, 128  ;;  %s769_s28 = scalar_lea.hbm %s1071_s5, 256 }
 0x23d   : > { %p766_p7 = scmp.ne.s32.totalorder %s1018_s15, %s765_s3  ;;  %p770_p9 = scmp.lt.s32.totalorder %s1018_s15, %s1071_s5 }
 0x23e   : > { %p771_p11 = scmp.lt.s32.totalorder %s769_s28, %s765_s3 }
 0x23f   : > { %p767_p6 = pnand %p766_p7, %p961_p13 }
 0x240   : > { %p772_p12 = por %p771_p11, %p770_p9 }
 0x241   : > { %p768_p4 = pneg %p767_p6 }
 0x243   : > { %p773_p1 = pnand %p772_p12, %p768_p4 }
 0x245   : > { %776 = shalt.err (!%p773_p1)
}
 0x246   : > { %616 = dma.vmem_to_hbm [thread:$0]  (%p961_p13), %s1020_s14, 128, %s1018_s15, %s437_s8   ;;  %v609_v32 = vpop.f32.mrf.mxu0 }
 0x247 PF: > { %s463_s11 = sand.u32 1, %s815_s18   ;;  %p1087_p8 = scmp.ne.s32.totalorder %s1078_s29, 0 }
 0x248   : > { %p1088_p10 = scmp.ge.s32.totalorder %s835_s23, 2  ;;  %s464_s12 = scalar_lea.sflag [#allocation4], %s463_s11 }
 0x24a   : > { %p627_p0 = pnand %p1088_p10, %p1087_p8 }
 0x24c   : > { %p628_p2 = pneg %p627_p0 }
 0x24e   : > { %810 = dma.done.wait (%p628_p2), %s464_s12, 128  }
 0x24f   : > { %812 = vsyncadd (%p628_p2), %s464_s12, 4294967168  ;;  %s22_s23 = sadd.s32 1, %s835_s23   ;;  %s1089_s17 = sld [smem:[#allocation11_spill]] }
 0x250   : > { %p19_p3 = scmp.ge.s32.totalorder %s22_s23, 4   ;;  %s1090_s18 = smov %s819_s19 }
 0x251   : > { %s1091_s19 = smov %s823_s20  ;;  %s1092_s20 = smov %s970_s7 }
 0x252   : > { %s1093_s21 = smov %s831_s22  ;;  %21 = sbr.rel (!%p19_p3) target bundleno = 9 (0x9), region = 93 }
 0x255   : > { %s1094_s22 = smov %s1089_s17 }
 0x257   :  { %469 = vsyncpa [#allocation3], 1 }
 0x258   :  { %471 = vsyncpa [#allocation3 + $0x1], 1 }
 0x259   :  { %472 = vsyncpa [#allocation6], 1 }
 0x25a   :  { %473 = vsyncpa [#allocation4], 1 }
 0x25b   :  { %475 = vsyncpa [#allocation4 + $0x1], 1 }

</bundles_post_ra>
